<compile_context>
chip_gen: v7x
topology: tpu7x:2x2x1
jax: 0.10.0
libtpu: 0.0.40
codegen_flags: <defaults>
</compile_context>

<pallas_src>
import functools

import jax
import jax.numpy as jnp
from jax import lax
from jax.experimental import pallas as pl
from jax.experimental.pallas import tpu as pltpu


def _discriminator_kernel(x_ref, w1_ref, b1_ref, w2_ref, b2_ref, w3_ref,
                          b3_ref, o_ref, *, batch_on_lanes, mxu_dtype):
    # Computes one batch tile, transposed:
    #   h1^T = W1 @ x^T + b1    (VPU rank-1 broadcast when input_dim == 1)
    #   h2^T = W2 @ h1^T + b2   (MXU; batch is the large N dim)
    #   y^T  = W3 @ h2^T + b3   (MXU)
    w1 = w1_ref[...]                                      # (H, IN) f32

    if batch_on_lanes:
        x_t = x_ref[...]                                  # (IN, TB)
        if w1.shape[1] == 1:
            # K == 1: rank-1 outer product -> pure VPU broadcast FMA.
            h1 = w1 * x_t + b1_ref[...]                   # (H, TB)
        else:
            h1 = jnp.dot(w1, x_t,
                         preferred_element_type=jnp.float32) + b1_ref[...]
    else:
        # x tile arrives in its native (TB, IN) HBM layout; contract the IN
        # axes directly so no HBM transpose (wrapper) nor materialized
        # in-kernel transpose is needed.
        h1 = lax.dot_general(w1, x_ref[...], (((1,), (1,)), ((), ())),
                             preferred_element_type=jnp.float32) + b1_ref[...]
    h1 = jnp.maximum(h1, 0.2 * h1)                        # LeakyReLU(0.2)

    # w2 / w3 are pre-cast to mxu_dtype in the wrapper; only activations cast
    # here (per-step, unavoidable).  Accumulation stays f32.
    h2 = jnp.dot(w2_ref[...], h1.astype(mxu_dtype),
                 preferred_element_type=jnp.float32) + b2_ref[...]   # (H, TB)
    h2 = jnp.maximum(h2, 0.2 * h2)                        # LeakyReLU(0.2)

    out = jnp.dot(w3_ref[...], h2.astype(mxu_dtype),
                  preferred_element_type=jnp.float32)                # (1, TB)
    o_ref[...] = (out + b3_ref[0, 0]).astype(o_ref.dtype)


def _auto_tile_b(batch):
    """Pick a lane-axis batch tile: as big as possible to amortize the ~0.35us
    per-grid-step overhead, but (a) keep >= 2 grid steps when the batch allows
    (v7x megacore via dimension_semantics=('parallel',)) and (b) cap at 4096 so
    the ~1.5KB * tile_b of f32+bf16 intermediates stays comfortably inside the
    scoped-VMEM default on every TPU generation (incl. v5e's 16 MiB)."""
    b_ceil = max(128, pl.cdiv(batch, 128) * 128)
    half = max(128, ((b_ceil // 2) // 128) * 128)
    return int(min(4096, half))


def discriminator_forward(x, params, *, tile_b=None, mxu_dtype=jnp.bfloat16):
    """x: (B, input_dim) float32.  params: PyTorch-layout weights/biases.

    mxu_dtype=bfloat16 (default) feeds the W2/W3 MXU matmuls with bf16 inputs
    and f32 accumulation; pass jnp.float32 for strict PyTorch parity.
    """
    B, in_dim = x.shape
    w1, b1 = params["w1"], params["b1"]                   # (H, IN), (H, 1)
    w2, b2 = params["w2"], params["b2"]                   # (H, H),  (H, 1)
    w3, b3 = params["w3"], params["b3"]                   # (1, H),  (1, 1)
    H = w1.shape[0]

    if tile_b is None:
        tile_b = _auto_tile_b(B)
    assert tile_b % 128 == 0, "tile_b must be a multiple of 128"

    # Pre-cast MXU weights once (wrapper-side), not per grid step.
    w2c = w2.astype(mxu_dtype)
    w3c = w3.astype(mxu_dtype)

    batch_on_lanes = (in_dim == 1)
    if batch_on_lanes:
        # (B, 1) -> (1, B): contiguous, pure reshape -- no HBM transpose/copy.
        x_in = jnp.reshape(x, (1, B))
        x_spec = pl.BlockSpec((1, tile_b), lambda i: (0, i))
    else:
        # Keep x in its (B, in_dim) HBM layout; contract inside the kernel.
        x_in = x
        x_spec = pl.BlockSpec((tile_b, in_dim), lambda i: (i, 0))

    # No wrapper-side padding: Pallas handles the ragged last block.  OOB batch
    # lanes contain undefined data but every output column depends only on its
    # own input column (no batch reduction), and their stores are discarded.
    grid = (pl.cdiv(B, tile_b),)

    kernel = functools.partial(_discriminator_kernel,
                               batch_on_lanes=batch_on_lanes,
                               mxu_dtype=mxu_dtype)

    out_t = pl.pallas_call(
        kernel,
        out_shape=jax.ShapeDtypeStruct((1, B), x.dtype),
        grid_spec=pltpu.PrefetchScalarGridSpec(
            num_scalar_prefetch=0,
            grid=grid,
            in_specs=[
                x_spec,                                              # x tile
                pl.BlockSpec((H, in_dim), lambda i: (0, 0)),         # w1 (full)
                pl.BlockSpec((H, 1), lambda i: (0, 0)),              # b1
                pl.BlockSpec((H, H), lambda i: (0, 0)),              # w2 (mxu_dtype)
                pl.BlockSpec((H, 1), lambda i: (0, 0)),              # b2
                pl.BlockSpec((1, H), lambda i: (0, 0)),              # w3 (mxu_dtype)
                pl.BlockSpec(memory_space=pltpu.MemorySpace.SMEM),   # b3 scalar
            ],
            out_specs=pl.BlockSpec((1, tile_b), lambda i: (0, i)),   # lane-dense
        ),
        compiler_params=pltpu.CompilerParams(
            dimension_semantics=("parallel",),   # shard batch tiles across TCs (v7x)
        ),
    )(x_in, w1, b1, w2c, b2, w3c, b3)

    # (1, B) -> (B, 1): contiguous, pure reshape -- no HBM transpose.
    return jnp.reshape(out_t, (B, 1))


def init_params(key, input_dim=1, hidden_dim=128, dtype=jnp.float32):
    """PyTorch-layout params: W is (out_features, in_features); biases as columns."""
    ks = jax.random.split(key, 6)

    def uniform(k, shape, fan_in):
        bound = float(fan_in) ** -0.5
        return jax.random.uniform(k, shape, dtype, minval=-bound, maxval=bound)

    return {
        "w1": uniform(ks[0], (hidden_dim, input_dim), input_dim),
        "b1": uniform(ks[1], (hidden_dim, 1), input_dim),
        "w2": uniform(ks[2], (hidden_dim, hidden_dim), hidden_dim),
        "b2": uniform(ks[3], (hidden_dim, 1), hidden_dim),
        "w3": uniform(ks[4], (1, hidden_dim), hidden_dim),
        "b3": uniform(ks[5], (1, 1), hidden_dim),
    }


def _reference_forward(x, p):
    # Mirrors torch: y = x @ W.T + b for each Linear, LeakyReLU(0.2) between.
    h1 = x @ p["w1"].T + p["b1"][:, 0]
    h1 = jnp.where(h1 >= 0, h1, 0.2 * h1)
    h2 = h1 @ p["w2"].T + p["b2"][:, 0]
    h2 = jnp.where(h2 >= 0, h2, 0.2 * h2)
    return h2 @ p["w3"].T + p["b3"][:, 0]


if __name__ == "__main__":
    key = jax.random.PRNGKey(0)
    k_params, k_x = jax.random.split(key)

    input_dim, hidden_dim = 1, 128        # module defaults
    batch = 512                           # auto tile_b=256 -> 2 "parallel" steps

    params = init_params(k_params, input_dim=input_dim, hidden_dim=hidden_dim)
    x = jax.random.normal(k_x, (batch, input_dim), dtype=jnp.float32)
    ref = _reference_forward(x, params)

    # Strict-parity f32 MXU path (matches the PyTorch module's numerics).
    out_f32 = jax.block_until_ready(
        discriminator_forward(x, params, mxu_dtype=jnp.float32))
    assert out_f32.shape == (batch, 1), out_f32.shape
    assert jnp.allclose(out_f32, ref, atol=1e-4, rtol=1e-4), "f32 mismatch vs reference"

    # Default bf16-MXU fast path (f32 accumulation), ragged batch exercises the
    # partial last block (no wrapper-side padding anymore).
    x_ragged = x[:300]
    out_bf16 = jax.block_until_ready(discriminator_forward(x_ragged, params))
    assert out_bf16.shape == (300, 1), out_bf16.shape
    assert jnp.allclose(out_bf16, ref[:300], atol=5e-2, rtol=5e-2), "bf16 mismatch"

    print("KERNEL_OK")
</pallas_src>

<mosaic_0001>
module attributes {stable_mosaic.version = 11 : i64} {
  func.func @_discriminator_kernel(%arg0: i32, %arg1: memref<1x256xf32, #tpu.memory_space<vmem>>, %arg2: memref<128x1xf32, #tpu.memory_space<vmem>>, %arg3: memref<128x1xf32, #tpu.memory_space<vmem>>, %arg4: memref<128x128xf32, #tpu.memory_space<vmem>>, %arg5: memref<128x1xf32, #tpu.memory_space<vmem>>, %arg6: memref<1x128xf32, #tpu.memory_space<vmem>>, %arg7: memref<1x1xf32, #tpu.memory_space<smem>>, %arg8: memref<1x256xf32, #tpu.memory_space<vmem>>) attributes {dimension_semantics = [#tpu.dimension_semantics<parallel>], iteration_bounds = array<i64: 2>, scalar_prefetch = 0 : i64, scratch_operands = 0 : i64, tpu.core_type = #tpu.core_type<tc>, window_params = [{transform_indices = @transform_0, window_bounds = array<i64: 1, 256>}, {pipeline_mode = #tpu.pipeline_mode<synchronous>, transform_indices = @transform_1, window_bounds = array<i64: 128, 1>}, {pipeline_mode = #tpu.pipeline_mode<synchronous>, transform_indices = @transform_2, window_bounds = array<i64: 128, 1>}, {pipeline_mode = #tpu.pipeline_mode<synchronous>, transform_indices = @transform_3, window_bounds = array<i64: 128, 128>}, {pipeline_mode = #tpu.pipeline_mode<synchronous>, transform_indices = @transform_4, window_bounds = array<i64: 128, 1>}, {pipeline_mode = #tpu.pipeline_mode<synchronous>, transform_indices = @transform_5, window_bounds = array<i64: 1, 128>}, {transform_indices = @transform_6, window_bounds = array<i64: 1, 1>}, {transform_indices = @transform_7, window_bounds = array<i64: 1, 256>}]} {
    %c0 = arith.constant 0 : index
    %c0_0 = arith.constant 0 : index
    %0 = vector.load %arg2[%c0, %c0_0] : memref<128x1xf32, #tpu.memory_space<vmem>>, vector<128x1xf32>
    %c0_1 = arith.constant 0 : index
    %c0_2 = arith.constant 0 : index
    %1 = vector.load %arg1[%c0_1, %c0_2] : memref<1x256xf32, #tpu.memory_space<vmem>>, vector<1x256xf32>
    %2 = vector.broadcast %0 : vector<128x1xf32> to vector<128x256xf32>
    %3 = vector.broadcast %1 : vector<1x256xf32> to vector<128x256xf32>
    %4 = arith.mulf %2, %3 : vector<128x256xf32>
    %c0_3 = arith.constant 0 : index
    %c0_4 = arith.constant 0 : index
    %5 = vector.load %arg3[%c0_3, %c0_4] : memref<128x1xf32, #tpu.memory_space<vmem>>, vector<128x1xf32>
    %6 = vector.broadcast %5 : vector<128x1xf32> to vector<128x256xf32>
    %7 = arith.addf %4, %6 : vector<128x256xf32>
    %cst = arith.constant 2.000000e-01 : f32
    %8 = vector.broadcast %cst : f32 to vector<128x256xf32>
    %9 = arith.mulf %8, %7 : vector<128x256xf32>
    %10 = arith.maximumf %7, %9 : vector<128x256xf32>
    %c0_5 = arith.constant 0 : index
    %c0_6 = arith.constant 0 : index
    %11 = vector.load %arg4[%c0_5, %c0_6] : memref<128x128xf32, #tpu.memory_space<vmem>>, vector<128x128xf32>
    %cst_7 = arith.constant dense<0.000000e+00> : vector<128x256xf32>
    %12 = tpu.matmul %11, %10, %cst_7 {dimension_numbers = #tpu.dot_dimension_numbers<[1], [0], [0], [1], [0, 0, 1, 1], [], []>} : vector<128x128xf32>, vector<128x256xf32>, vector<128x256xf32> -> vector<128x256xf32>
    %c0_8 = arith.constant 0 : index
    %c0_9 = arith.constant 0 : index
    %13 = vector.load %arg5[%c0_8, %c0_9] : memref<128x1xf32, #tpu.memory_space<vmem>>, vector<128x1xf32>
    %14 = vector.broadcast %13 : vector<128x1xf32> to vector<128x256xf32>
    %15 = arith.addf %12, %14 : vector<128x256xf32>
    %cst_10 = arith.constant 2.000000e-01 : f32
    %16 = vector.broadcast %cst_10 : f32 to vector<128x256xf32>
    %17 = arith.mulf %16, %15 : vector<128x256xf32>
    %18 = arith.maximumf %15, %17 : vector<128x256xf32>
    %c0_11 = arith.constant 0 : index
    %c0_12 = arith.constant 0 : index
    %19 = vector.load %arg6[%c0_11, %c0_12] : memref<1x128xf32, #tpu.memory_space<vmem>>, vector<1x128xf32>
    %cst_13 = arith.constant dense<0.000000e+00> : vector<1x256xf32>
    %20 = tpu.matmul %19, %18, %cst_13 {dimension_numbers = #tpu.dot_dimension_numbers<[1], [0], [0], [1], [0, 0, 1, 1], [], []>} : vector<1x128xf32>, vector<128x256xf32>, vector<1x256xf32> -> vector<1x256xf32>
    %c0_14 = arith.constant 0 : index
    %c0_15 = arith.constant 0 : index
    %21 = memref.load %arg7[%c0_14, %c0_15] : memref<1x1xf32, #tpu.memory_space<smem>>
    %22 = vector.broadcast %21 : f32 to vector<1x256xf32>
    %23 = arith.addf %20, %22 : vector<1x256xf32>
    %c0_16 = arith.constant 0 : index
    %c0_17 = arith.constant 0 : index
    %24 = vector.load %arg8[%c0_16, %c0_17] : memref<1x256xf32, #tpu.memory_space<vmem>>, vector<1x256xf32>
    tpu.vector_store %arg8[%c0_16, %c0_17], %23 {strides = array<i32>} : memref<1x256xf32, #tpu.memory_space<vmem>>, vector<1x256xf32>,
    return
  }
  func.func @transform_0(%arg0: i32) -> (i32, i32) {
    %c0_i32 = arith.constant 0 : i32
    %c0_i32_0 = arith.constant 0 : i32
    return %c0_i32, %arg0 : i32, i32
  }
  func.func @transform_1(%arg0: i32) -> (i32, i32) {
    %c0_i32 = arith.constant 0 : i32
    %c0_i32_0 = arith.constant 0 : i32
    %c0_i32_1 = arith.constant 0 : i32
    return %c0_i32, %c0_i32_0 : i32, i32
  }
  func.func @transform_2(%arg0: i32) -> (i32, i32) {
    %c0_i32 = arith.constant 0 : i32
    %c0_i32_0 = arith.constant 0 : i32
    %c0_i32_1 = arith.constant 0 : i32
    return %c0_i32, %c0_i32_0 : i32, i32
  }
  func.func @transform_3(%arg0: i32) -> (i32, i32) {
    %c0_i32 = arith.constant 0 : i32
    %c0_i32_0 = arith.constant 0 : i32
    %c0_i32_1 = arith.constant 0 : i32
    return %c0_i32, %c0_i32_0 : i32, i32
  }
  func.func @transform_4(%arg0: i32) -> (i32, i32) {
    %c0_i32 = arith.constant 0 : i32
    %c0_i32_0 = arith.constant 0 : i32
    %c0_i32_1 = arith.constant 0 : i32
    return %c0_i32, %c0_i32_0 : i32, i32
  }
  func.func @transform_5(%arg0: i32) -> (i32, i32) {
    %c0_i32 = arith.constant 0 : i32
    %c0_i32_0 = arith.constant 0 : i32
    %c0_i32_1 = arith.constant 0 : i32
    return %c0_i32, %c0_i32_0 : i32, i32
  }
  func.func @transform_6(%arg0: i32) -> (i32, i32) {
    %c0_i32 = arith.constant 0 : i32
    %c0_i32_0 = arith.constant 0 : i32
    %c0_i32_1 = arith.constant 0 : i32
    return %c0_i32, %c0_i32_0 : i32, i32
  }
  func.func @transform_7(%arg0: i32) -> (i32, i32) {
    %c0_i32 = arith.constant 0 : i32
    %c0_i32_0 = arith.constant 0 : i32
    return %c0_i32, %arg0 : i32, i32
  }
}

</mosaic_0001>

<bundles_post_ra>
// kernel: tpu_custom_call.1
= control target key start
LH: loop header
LB: loop body
LE: loop exit
PB: predicated region body
PF: predicated region fallthrough
CT: control target
= control target key end

     0   :  { %s1700_s0 = inlined_call_operand.vmem [shape: f32[1,512], index: 0, kind: input, shape index: {}]   ;;  %s1701_s1 = inlined_call_operand.vmem [shape: f32[128,1], index: 1, kind: input, shape index: {}]   ;;  %s1702_s2 = inlined_call_operand.vmem [shape: f32[128,1], index: 2, kind: input, shape index: {}]   ;;  %s1703_s3 = inlined_call_operand.vmem [shape: f32[128,128], index: 3, kind: input, shape index: {}]   ;;  %s1704_s4 = inlined_call_operand.vmem [shape: f32[128,1], index: 4, kind: input, shape index: {}]   ;;  %s1705_s5 = inlined_call_operand.vmem [shape: f32[1,128], index: 5, kind: input, shape index: {}]   ;;  %s1706_s6 = inlined_call_operand.<no memory space> [shape: f32[1,1], index: 6, kind: input, shape index: {}]   ;;  %s1707_s7 = inlined_call_operand.hbm [shape: f32[1,512], index: 7, kind: output, shape index: {}]  }
   0x1   :  { %12 = sst [smem:[#allocation2]] %s1706_s6 }
   0x2   :  { %13 = vsyncpa [#allocation4], 0 }
   0x3   :  { %15 = vsyncpa [#allocation4 + $0x1], 0  ;;  %s1346_s26 = smov 0   ;;  %s1348_s27 = smov 0  }
   0x4   :  { %s1350_s28 = smov 0   ;;  %s1352_s29 = smov 0  }
   0x5 LB: > { %s1367_s6 = sadd.s32 4294967295, %s1297_s29   ;;  %s1115_s30 = sadd.s32 4294967294, %s1297_s29   ;;  %s1297_s29 = sphi %s1352_s29, %s1713_s29   ;;  %s1293_s28 = sphi %s1350_s28, %s1712_s28   ;;  %s1289_s27 = sphi %s1348_s27, %s1711_s27   ;;  %s1285_s26 = sphi %s1346_s26, %s1710_s26  }
   0x6   : > { %s1371_s8 = sadd.s32 1, %s1297_s29   ;;  %s180_s9 = sadd.s32 1, %s1293_s28 }
   0x7   : > { %s177_s10 = ssub.s32 %s1297_s29, %s1371_s8  ;;  %p190_p0 = scmp.ne.s32.totalorder %s1293_s28, %s1289_s27 }
   0x8   : > { %p178_p1 = scmp.eq.s32.totalorder %s177_s10, 0  ;;  %p191_p2 = scmp.eq.s32.totalorder %s1367_s6, 1 }
   0x9   : > { %p196_p3 = scmp.ne.s32.totalorder %s1289_s27, %s1285_s26  ;;  %p197_p4 = scmp.eq.s32.totalorder %s1115_s30, 1 }
   0xa   : > { %s1382_s11 = scalar_select %p178_p1, %s1293_s28, %s180_s9  }
   0xb   : > { %p1384_p5 = por %p191_p2, %p190_p0  ;;  %p1388_p6 = por %p197_p4, %p196_p3 }
   0xc   : > { %p1118_p7 = scmp.ge.s32.totalorder %s1297_s29, 1  ;;  %p241_p8 = scmp.lt.s32.totalorder %s1297_s29, 3 }
   0xe   : > { %p242_p9 = pnand %p1118_p7, %p241_p8 }
   0xf   : > { %v418_v0 = vld [vmem:[%s1702_s2] sm:$0xff] (!%p242_p9)  ;;  %v1299_v2 = vmov (!%p242_p9), 0   ;;  %v419_v3 = vld [vmem:[%s1702_s2 + $0x8] sm:$0xff] (!%p242_p9)  ;;  %v281_v5 = vld [vmem:[%s1701_s1 + $0x18] sm:$0xff] (!%p242_p9)  ;;  %v1300_v39 = vmov (!%p242_p9), 0.0   ;;  %s1120_s20 = sshll.u32 (!%p242_p9), %s1367_s6, 1  ;;  %v376_v50 = vlaneseq (!%p242_p9) }
  0x10   : > { %245 = sbr.rel (%p242_p9) target bundleno = 738 (0x2e2), region = 48  ;;  %v278_v1 = vld [vmem:[%s1701_s1] sm:$0xff] (!%p242_p9)  ;;  %1234 = vset.pattern.permute.xlu1 (!%p242_p9), %v1299_v2  ;;  %1233 = vset.pattern.permute.xlu0 (!%p242_p9), %v1299_v2  ;;  %v279_v4 = vld [vmem:[%s1701_s1 + $0x8] sm:$0xff] (!%p242_p9)  ;;  %v280_v6 = vld [vmem:[%s1701_s1 + $0x10] sm:$0xff] (!%p242_p9)  ;;  %p273_p10 = scmp.lt.s32.totalorder (!%p242_p9), %s1120_s20, 3 }
  0x11   : > { %436 = vperm.xlu1 (!%p242_p9), %1234, %v418_v0   ;;  %297 = vperm.xlu0 (!%p242_p9), %1233, %v278_v1   ;;  %v421_v7 = vld [vmem:[%s1702_s2 + $0x18] sm:$0xff] (!%p242_p9)  ;;  %v420_v8 = vld [vmem:[%s1702_s2 + $0x10] sm:$0xff] (!%p242_p9)  ;;  %v283_v9 = vld [vmem:[%s1701_s1 + $0x28] sm:$0xff] (!%p242_p9)  ;;  %v1542_v51 = vshrl.u32 (!%p242_p9), %v376_v50, 7  ;;  %s948_s10 = sld [smem:[#allocation2]] (!%p242_p9)  ;;  %s269_s14 = sand.u32 (!%p242_p9), 1, %s1289_s27  }
  0x12   : > { %v282_v10 = vld [vmem:[%s1701_s1 + $0x20] sm:$0xff] (!%p242_p9)  ;;  %v423_v11 = vld [vmem:[%s1702_s2 + $0x28] sm:$0xff] (!%p242_p9)  ;;  %v285_v13 = vld [vmem:[%s1701_s1 + $0x38] sm:$0xff] (!%p242_p9)  ;;  %786 = vmatprep.mubr.f32.mxu0 (!%p242_p9), %v1300_v39  ;;  %1014 = vmatprep.mubr.f32.mxu1 (!%p242_p9), %v1300_v39  ;;  %s1119_s15 = sshll.u32 (!%p242_p9), %s269_s14, 1  ;;  %s1126_s16 = sshll.u32 (!%p242_p9), %s1367_s6, 5  ;;  %vm1041_vm0 = vcmp.lt.s32.totalorder (!%p242_p9), %v376_v50, 256 }
  0x13   : > { %v422_v12 = vld [vmem:[%s1702_s2 + $0x20] sm:$0xff] (!%p242_p9)  ;;  %v284_v14 = vld [vmem:[%s1701_s1 + $0x30] sm:$0xff] (!%p242_p9)  ;;  %v425_v15 = vld [vmem:[%s1702_s2 + $0x38] sm:$0xff] (!%p242_p9)  ;;  %v378_v52 = vsub.s32 (!%p242_p9), 0, %v1542_v51  ;;  %v382_v53 = vsub.s32 (!%p242_p9), 1, %v1542_v51  ;;  %s271_s17 = scalar_lea.vmem (!%p242_p9), [#allocation3], %s1119_s15  ;;  %s1658_s21 = scalar_lea.hbm (!%p242_p9), %s1707_s7, %s1126_s16 }
  0x14   : > { %v424_v16 = vld [vmem:[%s1702_s2 + $0x30] sm:$0xff] (!%p242_p9)  ;;  %v287_v17 = vld [vmem:[%s1701_s1 + $0x48] sm:$0xff] (!%p242_p9)  ;;  %v286_v18 = vld [vmem:[%s1701_s1 + $0x40] sm:$0xff] (!%p242_p9)  ;;  %s1059_s18 = sshll.u32 (!%p242_p9), %s271_s17, 4  ;;  %s1045_s22 = scalar_lea.sflag (!%p242_p9), [#allocation4], %s269_s14  ;;  %s1660_s18 = int_to_ptr.vmem [resolvable:$true] %s1059_s18 }
  0x15   : > { %441 = vperm.xlu1 (!%p242_p9), %1234, %v419_v3   ;;  %302 = vperm.xlu0 (!%p242_p9), %1233, %v279_v4   ;;  %v427_v19 = vld [vmem:[%s1702_s2 + $0x48] sm:$0xff] (!%p242_p9)  ;;  %v426_v20 = vld [vmem:[%s1702_s2 + $0x40] sm:$0xff] (!%p242_p9)  ;;  %v289_v21 = vld [vmem:[%s1701_s1 + $0x58] sm:$0xff] (!%p242_p9)  ;;  %s1302_s6 = smov (!%p242_p9), [#allocation3]  }
  0x16   : > { %v288_v22 = vld [vmem:[%s1701_s1 + $0x50] sm:$0xff] (!%p242_p9)  ;;  %v429_v23 = vld [vmem:[%s1702_s2 + $0x58] sm:$0xff] (!%p242_p9)  ;;  %v291_v25 = vld [vmem:[%s1701_s1 + $0x68] sm:$0xff] (!%p242_p9)  ;;  %s1239_s24 = sshll.u32 (!%p242_p9), %s1302_s6, 4  ;;  %s1240_s24 = int_to_ptr.vmem [resolvable:$false] %s1239_s24 }
  0x17   : > { %v428_v24 = vld [vmem:[%s1702_s2 + $0x50] sm:$0xff]  ;;  %v290_v26 = vld [vmem:[%s1701_s1 + $0x60] sm:$0xff]  ;;  %v431_v27 = vld [vmem:[%s1702_s2 + $0x68] sm:$0xff]  ;;  %s1715_s20 = smov (!%p273_p10, %s1120_s20), 3  ;;  %s1241_s25 = scalar_lea.vmem %s1240_s24, 64 }
  0x18   : > { %v430_v28 = vld [vmem:[%s1702_s2 + $0x60] sm:$0xff]  ;;  %v293_v29 = vld [vmem:[%s1701_s1 + $0x78] sm:$0xff]  ;;  %v292_v30 = vld [vmem:[%s1701_s1 + $0x70] sm:$0xff]  ;;  %s275_s23 = scalar_lea.vmem %s1700_s0, %s1715_s20  ;;  %p1242_p0 = scmp.lt.s32.totalorder %s1660_s18, %s1240_s24 }
  0x19   : > { %312 = vperm.xlu1 %1234, %v281_v5   ;;  %307 = vperm.xlu0 %1233, %v280_v6   ;;  %v433_v31 = vld [vmem:[%s1702_s2 + $0x78] sm:$0xff]  ;;  %v432_v32 = vld [vmem:[%s1702_s2 + $0x70] sm:$0xff]  ;;  %v627_v33 = vld [vmem:[%s1704_s4 + $0x8] sm:$0xff] }
  0x1a   : > { %v626_v34 = vld [vmem:[%s1704_s4] sm:$0xff]  ;;  %v629_v35 = vld [vmem:[%s1704_s4 + $0x18] sm:$0xff]  ;;  %v628_v36 = vld [vmem:[%s1704_s4 + $0x10] sm:$0xff] }
  0x1b   : > { %v631_v37 = vld [vmem:[%s1704_s4 + $0x28] sm:$0xff]  ;;  %v630_v38 = vld [vmem:[%s1704_s4 + $0x20] sm:$0xff]  ;;  %v633_v40 = vld [vmem:[%s1704_s4 + $0x38] sm:$0xff] }
  0x1c   : > { %v632_v41 = vld [vmem:[%s1704_s4 + $0x30] sm:$0xff]  ;;  %v635_v42 = vld [vmem:[%s1704_s4 + $0x48] sm:$0xff]  ;;  %v634_v43 = vld [vmem:[%s1704_s4 + $0x40] sm:$0xff] }
  0x1d   : > { %451 = vperm.xlu1 %1234, %v421_v7   ;;  %446 = vperm.xlu0 %1233, %v420_v8   ;;  %v637_v44 = vld [vmem:[%s1704_s4 + $0x58] sm:$0xff]  ;;  %v636_v45 = vld [vmem:[%s1704_s4 + $0x50] sm:$0xff]  ;;  %v639_v46 = vld [vmem:[%s1704_s4 + $0x68] sm:$0xff] }
  0x1e   : > { %v638_v47 = vld [vmem:[%s1704_s4 + $0x60] sm:$0xff]  ;;  %v641_v48 = vld [vmem:[%s1704_s4 + $0x78] sm:$0xff]  ;;  %v640_v49 = vld [vmem:[%s1704_s4 + $0x70] sm:$0xff] }
  0x1f   : > { %v294_v54 = vld [vmem:[%s275_s23] sm:$0x3]  ;;  %s1235_s23 = scalar_lea.vmem %s1660_s18, 32 }
  0x20   : > { %v1549_v55 = vrot.slane %v294_v54, %v378_v52  ;;  %v1551_v56 = vrot.slane %v294_v54, %v382_v53  ;;  %p1236_p11 = scmp.ne.s32.totalorder %s1660_s18, %s1235_s23  ;;  %p1243_p1 = scmp.lt.s32.totalorder %s1241_s25, %s1235_s23 }
  0x21   : > { %322 = vperm.xlu1 %1234, %v283_v9   ;;  %317 = vperm.xlu0 %1233, %v282_v10  }
  0x22   : > { %p1237_p12 = pnand %p1236_p11, %p1384_p5  ;;  %p1244_p2 = por %p1243_p1, %p1242_p0 }
  0x24   : > { %p1238_p13 = pneg %p1237_p12 }
  0x25   : > { %461 = vperm.xlu1 %1234, %v423_v11   ;;  %456 = vperm.xlu0 %1233, %v422_v12  }
  0x26   : > { %p1245_p3 = pnand %p1244_p2, %p1238_p13 }
  0x29   : > { %332 = vperm.xlu1 %1234, %v285_v13   ;;  %327 = vperm.xlu0 %1233, %v284_v14  }
  0x2d   : > { %471 = vperm.xlu1 %1234, %v425_v15   ;;  %466 = vperm.xlu0 %1233, %v424_v16  }
  0x31   : > { %342 = vperm.xlu1 %1234, %v287_v17   ;;  %337 = vperm.xlu0 %1233, %v286_v18  }
  0x35   : > { %481 = vperm.xlu1 %1234, %v427_v19   ;;  %476 = vperm.xlu0 %1233, %v426_v20  }
  0x39   : > { %352 = vperm.xlu1 %1234, %v289_v21   ;;  %347 = vperm.xlu0 %1233, %v288_v22  }
  0x3d   : > { %491 = vperm.xlu1 %1234, %v429_v23   ;;  %486 = vperm.xlu0 %1233, %v428_v24  }
  0x41   : > { %362 = vperm.xlu1 %1234, %v291_v25   ;;  %357 = vperm.xlu0 %1233, %v290_v26  }
  0x45   : > { %501 = vperm.xlu1 %1234, %v431_v27   ;;  %496 = vperm.xlu0 %1233, %v430_v28  }
  0x49   : > { %372 = vperm.xlu1 %1234, %v293_v29   ;;  %367 = vperm.xlu0 %1233, %v292_v30  }
  0x4d   : > { %511 = vperm.xlu1 %1234, %v433_v31   ;;  %506 = vperm.xlu0 %1233, %v432_v32  }
  0x51   : > { %649 = vperm.xlu1 %1234, %v627_v33   ;;  %644 = vperm.xlu0 %1233, %v626_v34  }
  0x55   : > { %659 = vperm.xlu1 %1234, %v629_v35   ;;  %654 = vperm.xlu0 %1233, %v628_v36  }
  0x59   : > { %669 = vperm.xlu1 %1234, %v631_v37   ;;  %664 = vperm.xlu0 %1233, %v630_v38  }
  0x5d   : > { %679 = vperm.xlu1 %1234, %v633_v40   ;;  %674 = vperm.xlu0 %1233, %v632_v41  }
  0x61   : > { %689 = vperm.xlu1 %1234, %v635_v42   ;;  %684 = vperm.xlu0 %1233, %v634_v43  }
  0x65   : > { %699 = vperm.xlu1 %1234, %v637_v44   ;;  %694 = vperm.xlu0 %1233, %v636_v45  }
  0x69   : > { %709 = vperm.xlu1 %1234, %v639_v46   ;;  %704 = vperm.xlu0 %1233, %v638_v47  }
  0x6d   : > { %719 = vperm.xlu1 %1234, %v641_v48   ;;  %714 = vperm.xlu0 %1233, %v640_v49  }
  0x90   : > { %v437_v57 = vpop.permute.xlu1 %436  ;;  %v298_v58 = vpop.permute.xlu0 %297 }
  0x91   : > { %v386_v59 = vmul.f32 %v1549_v55, %v298_v58  ;;  %v387_v60 = vmul.f32 %v1551_v56, %v298_v58 }
  0x93   : > { %v514_v61 = vadd.f32 %v437_v57, %v386_v59  ;;  %v515_v62 = vadd.f32 %v437_v57, %v387_v60 }
  0x94   : > { %v442_v63 = vpop.permute.xlu1 %441  ;;  %v303_v0 = vpop.permute.xlu0 %302 }
  0x95   : > { %v388_v1 = vmul.f32 %v1549_v55, %v303_v0  ;;  %v389_v2 = vmul.f32 %v1551_v56, %v303_v0  ;;  %v547_v7 = vmul.f32 0.2, %v515_v62  ;;  %v546_v8 = vmul.f32 0.2, %v514_v61 }
  0x97   : > { %v516_v3 = vadd.f32 %v442_v63, %v388_v1  ;;  %v517_v4 = vadd.f32 %v442_v63, %v389_v2  ;;  %v579_v17 = vmax.f32 %v515_v62, %v547_v7  ;;  %v578_v19 = vmax.f32 %v514_v61, %v546_v8 }
  0x98   : > { %v313_v5 = vpop.permute.xlu1 %312  ;;  %v308_v6 = vpop.permute.xlu0 %307 }
  0x99   : > { %v549_v9 = vmul.f32 0.2, %v517_v4  ;;  %v548_v10 = vmul.f32 0.2, %v516_v3  ;;  %v392_v11 = vmul.f32 %v1549_v55, %v313_v5  ;;  %v393_v12 = vmul.f32 %v1551_v56, %v313_v5 }
  0x9a   : > { %v390_v13 = vmul.f32 %v1549_v55, %v308_v6  ;;  %v391_v14 = vmul.f32 %v1551_v56, %v308_v6 }
  0x9b   : > { %v581_v18 = vmax.f32 %v517_v4, %v549_v9  ;;  %v580_v20 = vmax.f32 %v516_v3, %v548_v10 }
  0x9c   : > { %v452_v15 = vpop.permute.xlu1 %451  ;;  %v447_v16 = vpop.permute.xlu0 %446 }
  0x9d   : > { %v520_v21 = vadd.f32 %v452_v15, %v392_v11  ;;  %v521_v22 = vadd.f32 %v452_v15, %v393_v12  ;;  %v518_v23 = vadd.f32 %v447_v16, %v390_v13  ;;  %v519_v24 = vadd.f32 %v447_v16, %v391_v14 }
  0x9e   : > { %v1127_v25 = vpack.c.bf16 %v581_v18, %v579_v17  ;;  %v1129_v26 = vpack.c.bf16 %v580_v20, %v578_v19 }
  0x9f   : > { %v552_v27 = vmul.f32 0.2, %v520_v21  ;;  %v553_v28 = vmul.f32 0.2, %v521_v22  ;;  %v550_v29 = vmul.f32 0.2, %v518_v23 }
  0xa0   : > { %v551_v30 = vmul.f32 0.2, %v519_v24  ;;  %1128 = vmatprep.subr.bf16.mxu0 %v1127_v25  ;;  %v323_v31 = vpop.permute.xlu1 %322  ;;  %v318_v32 = vpop.permute.xlu0 %317 }
  0xa1   : > { %v584_v33 = vmax.f32 %v520_v21, %v552_v27  ;;  %v585_v34 = vmax.f32 %v521_v22, %v553_v28  ;;  %v582_v35 = vmax.f32 %v518_v23, %v550_v29  ;;  %1130 = vmatpush1.bf16.msra.mxu0 %v1129_v26  ;;  %v396_v37 = vmul.f32 %v1549_v55, %v323_v31 }
  0xa2   : > { %v583_v36 = vmax.f32 %v519_v24, %v551_v30  ;;  %v397_v38 = vmul.f32 %v1551_v56, %v323_v31  ;;  %v394_v40 = vmul.f32 %v1549_v55, %v318_v32  ;;  %v395_v41 = vmul.f32 %v1551_v56, %v318_v32 }
  0xa3   : > { %v1133_v42 = vpack.c.bf16 %v584_v33, %v582_v35 }
  0xa4   : > { %v462_v43 = vpop.permute.xlu1 %461  ;;  %v457_v44 = vpop.permute.xlu0 %456  ;;  %v1131_v45 = vpack.c.bf16 %v585_v34, %v583_v36 }
  0xa5   : > { %v524_v46 = vadd.f32 %v462_v43, %v396_v37  ;;  %v525_v47 = vadd.f32 %v462_v43, %v397_v38  ;;  %v522_v48 = vadd.f32 %v457_v44, %v394_v40  ;;  %v523_v49 = vadd.f32 %v457_v44, %v395_v41 }
  0xa6   : > { %1132 = vmatprep.subr.bf16.mxu0 %v1131_v45 }
  0xa7   : > { %v556_v52 = vmul.f32 0.2, %v524_v46  ;;  %v557_v53 = vmul.f32 0.2, %v525_v47  ;;  %v554_v54 = vmul.f32 0.2, %v522_v48  ;;  %1134 = vmatpush1.bf16.msra.mxu0 %v1133_v42 }
  0xa8   : > { %v555_v57 = vmul.f32 0.2, %v523_v49  ;;  %v333_v58 = vpop.permute.xlu1 %332  ;;  %v328_v59 = vpop.permute.xlu0 %327 }
  0xa9   : > { %v588_v60 = vmax.f32 %v524_v46, %v556_v52  ;;  %v589_v61 = vmax.f32 %v525_v47, %v557_v53  ;;  %v586_v62 = vmax.f32 %v522_v48, %v554_v54  ;;  %v400_v0 = vmul.f32 %v1549_v55, %v333_v58 }
  0xaa   : > { %v587_v63 = vmax.f32 %v523_v49, %v555_v57  ;;  %v401_v1 = vmul.f32 %v1551_v56, %v333_v58  ;;  %v398_v2 = vmul.f32 %v1549_v55, %v328_v59  ;;  %v399_v3 = vmul.f32 %v1551_v56, %v328_v59 }
  0xab   : > { %v1137_v4 = vpack.c.bf16 %v588_v60, %v586_v62 }
  0xac   : > { %v472_v5 = vpop.permute.xlu1 %471  ;;  %v467_v6 = vpop.permute.xlu0 %466  ;;  %v1135_v7 = vpack.c.bf16 %v589_v61, %v587_v63 }
  0xad   : > { %v528_v8 = vadd.f32 %v472_v5, %v400_v0  ;;  %v529_v9 = vadd.f32 %v472_v5, %v401_v1  ;;  %v526_v10 = vadd.f32 %v467_v6, %v398_v2  ;;  %v527_v11 = vadd.f32 %v467_v6, %v399_v3 }
  0xae   : > { %1136 = vmatprep.subr.bf16.mxu0 %v1135_v7 }
  0xaf   : > { %v560_v12 = vmul.f32 0.2, %v528_v8  ;;  %v561_v13 = vmul.f32 0.2, %v529_v9  ;;  %v558_v14 = vmul.f32 0.2, %v526_v10  ;;  %1138 = vmatpush1.bf16.msra.mxu0 %v1137_v4 }
  0xb0   : > { %v559_v15 = vmul.f32 0.2, %v527_v11  ;;  %v343_v16 = vpop.permute.xlu1 %342  ;;  %v338_v17 = vpop.permute.xlu0 %337 }
  0xb1   : > { %v592_v18 = vmax.f32 %v528_v8, %v560_v12  ;;  %v593_v19 = vmax.f32 %v529_v9, %v561_v13  ;;  %v590_v20 = vmax.f32 %v526_v10, %v558_v14  ;;  %v404_v22 = vmul.f32 %v1549_v55, %v343_v16 }
  0xb2   : > { %v591_v21 = vmax.f32 %v527_v11, %v559_v15  ;;  %v405_v23 = vmul.f32 %v1551_v56, %v343_v16  ;;  %v402_v24 = vmul.f32 %v1549_v55, %v338_v17  ;;  %v403_v25 = vmul.f32 %v1551_v56, %v338_v17 }
  0xb3   : > { %v1141_v26 = vpack.c.bf16 %v592_v18, %v590_v20 }
  0xb4   : > { %v482_v27 = vpop.permute.xlu1 %481  ;;  %v477_v28 = vpop.permute.xlu0 %476  ;;  %v1139_v29 = vpack.c.bf16 %v593_v19, %v591_v21 }
  0xb5   : > { %v532_v30 = vadd.f32 %v482_v27, %v404_v22  ;;  %v533_v31 = vadd.f32 %v482_v27, %v405_v23  ;;  %v530_v32 = vadd.f32 %v477_v28, %v402_v24  ;;  %v531_v33 = vadd.f32 %v477_v28, %v403_v25 }
  0xb6   : > { %1140 = vmatprep.subr.bf16.mxu0 %v1139_v29 }
  0xb7   : > { %v564_v34 = vmul.f32 0.2, %v532_v30  ;;  %v565_v35 = vmul.f32 0.2, %v533_v31  ;;  %v562_v36 = vmul.f32 0.2, %v530_v32  ;;  %1142 = vmatpush1.bf16.msra.mxu0 %v1141_v26 }
  0xb8   : > { %v563_v37 = vmul.f32 0.2, %v531_v33  ;;  %v353_v38 = vpop.permute.xlu1 %352  ;;  %v348_v40 = vpop.permute.xlu0 %347 }
  0xb9   : > { %v596_v41 = vmax.f32 %v532_v30, %v564_v34  ;;  %v597_v42 = vmax.f32 %v533_v31, %v565_v35  ;;  %v594_v43 = vmax.f32 %v530_v32, %v562_v36  ;;  %v408_v45 = vmul.f32 %v1549_v55, %v353_v38 }
  0xba   : > { %v595_v44 = vmax.f32 %v531_v33, %v563_v37  ;;  %v409_v46 = vmul.f32 %v1551_v56, %v353_v38  ;;  %v406_v47 = vmul.f32 %v1549_v55, %v348_v40  ;;  %v407_v48 = vmul.f32 %v1551_v56, %v348_v40 }
  0xbb   : > { %v1145_v49 = vpack.c.bf16 %v596_v41, %v594_v43 }
  0xbc   : > { %v492_v52 = vpop.permute.xlu1 %491  ;;  %v487_v53 = vpop.permute.xlu0 %486  ;;  %v1143_v54 = vpack.c.bf16 %v597_v42, %v595_v44 }
  0xbd   : > { %v536_v57 = vadd.f32 %v492_v52, %v408_v45  ;;  %v537_v58 = vadd.f32 %v492_v52, %v409_v46  ;;  %v534_v59 = vadd.f32 %v487_v53, %v406_v47  ;;  %v535_v60 = vadd.f32 %v487_v53, %v407_v48  ;;  %v610_v52 = vld [vmem:[%s1703_s3] sm:$0xff]  ;;  %v611_v53 = vld [vmem:[%s1703_s3 + $0x8] sm:$0xff] }
  0xbe   : > { %1144 = vmatprep.subr.bf16.mxu0 %v1143_v54  ;;  %v612_v54 = vld [vmem:[%s1703_s3 + $0x10] sm:$0xff] }
  0xbf   : > { %v568_v61 = vmul.f32 0.2, %v536_v57  ;;  %v569_v62 = vmul.f32 0.2, %v537_v58  ;;  %v566_v63 = vmul.f32 0.2, %v534_v59  ;;  %1146 = vmatpush1.bf16.msra.mxu0 %v1145_v49 }
  0xc0   : > { %v567_v0 = vmul.f32 0.2, %v535_v60  ;;  %v363_v1 = vpop.permute.xlu1 %362  ;;  %v358_v2 = vpop.permute.xlu0 %357 }
  0xc1   : > { %v600_v3 = vmax.f32 %v536_v57, %v568_v61  ;;  %v601_v4 = vmax.f32 %v537_v58, %v569_v62  ;;  %v598_v5 = vmax.f32 %v534_v59, %v566_v63  ;;  %v412_v7 = vmul.f32 %v1549_v55, %v363_v1  ;;  %v613_v57 = vld [vmem:[%s1703_s3 + $0x18] sm:$0xff]  ;;  %v614_v58 = vld [vmem:[%s1703_s3 + $0x20] sm:$0xff]  ;;  %v615_v59 = vld [vmem:[%s1703_s3 + $0x28] sm:$0xff] }
  0xc2   : > { %v599_v6 = vmax.f32 %v535_v60, %v567_v0  ;;  %v413_v8 = vmul.f32 %v1551_v56, %v363_v1  ;;  %v410_v9 = vmul.f32 %v1549_v55, %v358_v2  ;;  %v411_v10 = vmul.f32 %v1551_v56, %v358_v2  ;;  %v616_v60 = vld [vmem:[%s1703_s3 + $0x30] sm:$0xff]  ;;  %v617_v61 = vld [vmem:[%s1703_s3 + $0x38] sm:$0xff]  ;;  %v618_v62 = vld [vmem:[%s1703_s3 + $0x40] sm:$0xff] }
  0xc3   : > { %v1149_v11 = vpack.c.bf16 %v600_v3, %v598_v5  ;;  %v619_v63 = vld [vmem:[%s1703_s3 + $0x48] sm:$0xff]  ;;  %v620_v0 = vld [vmem:[%s1703_s3 + $0x50] sm:$0xff]  ;;  %v621_v1 = vld [vmem:[%s1703_s3 + $0x58] sm:$0xff] }
  0xc4   : > { %v502_v12 = vpop.permute.xlu1 %501  ;;  %v497_v13 = vpop.permute.xlu0 %496  ;;  %v1147_v14 = vpack.c.bf16 %v601_v4, %v599_v6  ;;  %v622_v2 = vld [vmem:[%s1703_s3 + $0x60] sm:$0xff]  ;;  %v623_v3 = vld [vmem:[%s1703_s3 + $0x68] sm:$0xff]  ;;  %v624_v4 = vld [vmem:[%s1703_s3 + $0x70] sm:$0xff] }
  0xc5   : > { %v540_v15 = vadd.f32 %v502_v12, %v412_v7  ;;  %v541_v16 = vadd.f32 %v502_v12, %v413_v8  ;;  %v538_v17 = vadd.f32 %v497_v13, %v410_v9  ;;  %v539_v18 = vadd.f32 %v497_v13, %v411_v10  ;;  %v625_v5 = vld [vmem:[%s1703_s3 + $0x78] sm:$0xff] }
  0xc6   : > { %1148 = vmatprep.subr.bf16.mxu0 %v1147_v14 }
  0xc7   : > { %v572_v19 = vmul.f32 0.2, %v540_v15  ;;  %v573_v20 = vmul.f32 0.2, %v541_v16  ;;  %v570_v21 = vmul.f32 0.2, %v538_v17  ;;  %1150 = vmatpush1.bf16.msra.mxu0 %v1149_v11 }
  0xc8   : > { %v571_v22 = vmul.f32 0.2, %v539_v18  ;;  %v373_v23 = vpop.permute.xlu1 %372  ;;  %v368_v24 = vpop.permute.xlu0 %367 }
  0xc9   : > { %v604_v25 = vmax.f32 %v540_v15, %v572_v19  ;;  %v605_v26 = vmax.f32 %v541_v16, %v573_v20  ;;  %v602_v27 = vmax.f32 %v538_v17, %v570_v21  ;;  %v416_v29 = vmul.f32 %v1549_v55, %v373_v23 }
  0xca   : > { %v603_v28 = vmax.f32 %v539_v18, %v571_v22  ;;  %v417_v30 = vmul.f32 %v1551_v56, %v373_v23  ;;  %v414_v31 = vmul.f32 %v1549_v55, %v368_v24  ;;  %v415_v32 = vmul.f32 %v1551_v56, %v368_v24 }
  0xcb   : > { %v1153_v33 = vpack.c.bf16 %v604_v25, %v602_v27 }
  0xcc   : > { %v512_v34 = vpop.permute.xlu1 %511  ;;  %v507_v35 = vpop.permute.xlu0 %506  ;;  %v1151_v36 = vpack.c.bf16 %v605_v26, %v603_v28 }
  0xcd   : > { %v544_v37 = vadd.f32 %v512_v34, %v416_v29  ;;  %v545_v38 = vadd.f32 %v512_v34, %v417_v30  ;;  %v542_v40 = vadd.f32 %v507_v35, %v414_v31  ;;  %v543_v41 = vadd.f32 %v507_v35, %v415_v32 }
  0xce   : > { %1152 = vmatprep.subr.bf16.mxu0 %v1151_v36 }
  0xcf   : > { %v576_v42 = vmul.f32 0.2, %v544_v37  ;;  %v577_v43 = vmul.f32 0.2, %v545_v38  ;;  %v574_v44 = vmul.f32 0.2, %v542_v40  ;;  %1154 = vmatpush1.bf16.msra.mxu0 %v1153_v33 }
  0xd0   : > { %v575_v45 = vmul.f32 0.2, %v543_v41  ;;  %v645_v6 = vpop.permute.xlu0 %644  ;;  %v650_v11 = vpop.permute.xlu1 %649 }
  0xd1   : > { %v608_v46 = vmax.f32 %v544_v37, %v576_v42  ;;  %v609_v47 = vmax.f32 %v545_v38, %v577_v43  ;;  %v606_v48 = vmax.f32 %v542_v40, %v574_v44 }
  0xd2   : > { %v607_v55 = vmax.f32 %v543_v41, %v575_v45 }
  0xd3   : > { %v1157_v49 = vpack.c.bf16 %v608_v46, %v606_v48 }
  0xd4   : > { %v1155_v56 = vpack.c.bf16 %v609_v47, %v607_v55  ;;  %v655_v19 = vpop.permute.xlu0 %654  ;;  %v660_v29 = vpop.permute.xlu1 %659 }
  0xd6   : > { %1156 = vmatprep.subr.bf16.mxu0 %v1155_v56 }
  0xd7   : > { %1158 = vmatpush1.bf16.msra.mxu0 %v1157_v49 }
  0xd8   : > { %v665_v38 = vpop.permute.xlu0 %664  ;;  %v670_v49 = vpop.permute.xlu1 %669 }
  0xda   : > { %787 = vmatmul.mubr.f32.vlgmr.msra.gmra.mrb[0].mxu0 %v610_v52 }
  0xdb   : > { %792 = vmatprep.mubr.f32.mxu0 %v1300_v39 }
  0xde   : > { %793 = vmatmul.mubr.f32.gmra.mrb[2].mxu0 %v611_v53 }
  0xdf   : > { %798 = vmatprep.mubr.f32.mxu0 %v1300_v39 }
  0xe2   : > { %799 = vmatmul.mubr.f32.gmra.mrb[4].mxu0 %v612_v54 }
  0xe3   : > { %804 = vmatprep.mubr.f32.mxu0 %v1300_v39 }
  0xe6   : > { %805 = vmatmul.mubr.f32.gmra.mrb[6].mxu0 %v613_v57 }
  0xe7   : > { %810 = vmatprep.mubr.f32.mxu0 %v1300_v39 }
  0xea   : > { %811 = vmatmul.mubr.f32.gmra.mrb[8].mxu0 %v614_v58 }
  0xeb   : > { %816 = vmatprep.mubr.f32.mxu0 %v1300_v39 }
  0xee   : > { %817 = vmatmul.mubr.f32.gmra.mrb[10].mxu0 %v615_v59 }
  0xef   : > { %822 = vmatprep.mubr.f32.mxu0 %v1300_v39 }
  0xf2   : > { %823 = vmatmul.mubr.f32.gmra.mrb[12].mxu0 %v616_v60 }
  0xf3   : > { %828 = vmatprep.mubr.f32.mxu0 %v1300_v39 }
  0xf6   : > { %829 = vmatmul.mubr.f32.gmra.mrb[14].mxu0 %v617_v61  ;;  %v675_v61 = vpop.permute.xlu0 %674 }
  0xf7   : > { %834 = vmatprep.mubr.f32.mxu0 %v1300_v39 }
  0xfa   : > { %835 = vmatmul.mubr.f32.gmra.mrb[16].mxu0 %v618_v62 }
  0xfb   : > { %840 = vmatprep.mubr.f32.mxu0 %v1300_v39 }
  0xfe   : > { %841 = vmatmul.mubr.f32.gmra.mrb[18].mxu0 %v619_v63 }
  0xff   : > { %846 = vmatprep.mubr.f32.mxu0 %v1300_v39 }
 0x102   : > { %847 = vmatmul.mubr.f32.gmra.mrb[20].mxu0 %v620_v0 }
 0x103   : > { %852 = vmatprep.mubr.f32.mxu0 %v1300_v39 }
 0x106   : > { %853 = vmatmul.mubr.f32.gmra.mrb[22].mxu0 %v621_v1 }
 0x107   : > { %858 = vmatprep.mubr.f32.mxu0 %v1300_v39 }
 0x10a   : > { %859 = vmatmul.mubr.f32.gmra.mrb[24].mxu0 %v622_v2 }
 0x10b   : > { %864 = vmatprep.mubr.f32.mxu0 %v1300_v39 }
 0x10e   : > { %865 = vmatmul.mubr.f32.gmra.mrb[26].mxu0 %v623_v3 }
 0x10f   : > { %870 = vmatprep.mubr.f32.mxu0 %v1300_v39 }
 0x112   : > { %871 = vmatmul.mubr.f32.gmra.mrb[28].mxu0 %v624_v4 }
 0x113   : > { %876 = vmatprep.mubr.f32.mxu0 %v1300_v39 }
 0x116   : > { %877 = vmatmul.mubr.f32.gmra.mrb[30].mxu0 %v625_v5 }
 0x1ad   : > { %v788_v7 = vpop.f32.mrb[0].mxu0 }
 0x1ae   : > { %v789_v8 = vadd.f32 %v788_v7, %v645_v6  ;;  %v790_v9 = vpop.f32.mrb[1].mxu0 }
 0x1af   : > { %v791_v10 = vadd.f32 %v790_v9, %v645_v6 }
 0x1b0   : > { %v883_v13 = vmul.f32 0.2, %v789_v8 }
 0x1b1   : > { %v794_v12 = vpop.f32.mrb[2].mxu0  ;;  %v884_v16 = vmul.f32 0.2, %v791_v10 }
 0x1b2   : > { %v795_v14 = vadd.f32 %v794_v12, %v650_v11  ;;  %v796_v15 = vpop.f32.mrb[3].mxu0  ;;  %v915_v21 = vmax.f32 %v789_v8, %v883_v13  ;;  %v680_v8 = vpop.permute.xlu1 %679 }
 0x1b3   : > { %v797_v17 = vadd.f32 %v796_v15, %v650_v11  ;;  %v916_v26 = vmax.f32 %v791_v10, %v884_v16 }
 0x1b4   : > { %v885_v18 = vmul.f32 0.2, %v795_v14 }
 0x1b5   : > { %v886_v39 = vmul.f32 0.2, %v797_v17  ;;  %v800_v20 = vpop.f32.mrb[4].mxu0 }
 0x1b6   : > { %v917_v22 = vmax.f32 %v795_v14, %v885_v18  ;;  %v801_v23 = vadd.f32 %v800_v20, %v655_v19  ;;  %v802_v24 = vpop.f32.mrb[5].mxu0 }
 0x1b7   : > { %v803_v25 = vadd.f32 %v802_v24, %v655_v19  ;;  %v918_v27 = vmax.f32 %v797_v17, %v886_v39  ;;  %v685_v17 = vpop.permute.xlu0 %684 }
 0x1b8   : > { %v1161_v28 = vpack.c.bf16 %v917_v22, %v915_v21  ;;  %v887_v32 = vmul.f32 0.2, %v801_v23 }
 0x1b9   : > { %v806_v30 = vpop.f32.mrb[6].mxu0  ;;  %v1159_v31 = vpack.c.bf16 %v918_v27, %v916_v26  ;;  %v888_v35 = vmul.f32 0.2, %v803_v25  ;;  %v690_v27 = vpop.permute.xlu1 %689 }
 0x1ba   : > { %v807_v33 = vadd.f32 %v806_v30, %v660_v29  ;;  %v808_v34 = vpop.f32.mrb[7].mxu0  ;;  %v919_v42 = vmax.f32 %v801_v23, %v887_v32 }
 0x1bb   : > { %v809_v36 = vadd.f32 %v808_v34, %v660_v29  ;;  %1160 = vmatprep.subr.bf16.mxu1 %v1159_v31  ;;  %v920_v46 = vmax.f32 %v803_v25, %v888_v35 }
 0x1bc   : > { %v889_v37 = vmul.f32 0.2, %v807_v33  ;;  %1162 = vmatpush1.bf16.msra.mxu1 %v1161_v28 }
 0x1bd   : > { %v890_v40 = vmul.f32 0.2, %v809_v36  ;;  %v812_v41 = vpop.f32.mrb[8].mxu0 }
 0x1be   : > { %v921_v43 = vmax.f32 %v807_v33, %v889_v37  ;;  %v813_v44 = vadd.f32 %v812_v41, %v665_v38  ;;  %v814_v45 = vpop.f32.mrb[9].mxu0 }
 0x1bf   : > { %v922_v47 = vmax.f32 %v809_v36, %v890_v40  ;;  %v815_v48 = vadd.f32 %v814_v45, %v665_v38  ;;  %v695_v36 = vpop.permute.xlu0 %694 }
 0x1c0   : > { %v1165_v55 = vpack.c.bf16 %v921_v43, %v919_v42  ;;  %v891_v53 = vmul.f32 0.2, %v813_v44 }
 0x1c1   : > { %v818_v56 = vpop.f32.mrb[10].mxu0  ;;  %v1163_v52 = vpack.c.bf16 %v922_v47, %v920_v46  ;;  %v892_v58 = vmul.f32 0.2, %v815_v48 }
 0x1c2   : > { %v819_v54 = vadd.f32 %v818_v56, %v670_v49  ;;  %v820_v57 = vpop.f32.mrb[11].mxu0  ;;  %v923_v0 = vmax.f32 %v813_v44, %v891_v53 }
 0x1c3   : > { %v821_v59 = vadd.f32 %v820_v57, %v670_v49  ;;  %1164 = vmatprep.subr.bf16.mxu1 %v1163_v52  ;;  %v924_v4 = vmax.f32 %v815_v48, %v892_v58  ;;  %v700_v48 = vpop.permute.xlu1 %699 }
 0x1c4   : > { %v893_v60 = vmul.f32 0.2, %v819_v54  ;;  %1166 = vmatpush1.bf16.msra.mxu1 %v1165_v55 }
 0x1c5   : > { %v894_v62 = vmul.f32 0.2, %v821_v59  ;;  %v824_v63 = vpop.f32.mrb[12].mxu0 }
 0x1c6   : > { %v925_v1 = vmax.f32 %v819_v54, %v893_v60  ;;  %v825_v2 = vadd.f32 %v824_v63, %v675_v61  ;;  %v826_v3 = vpop.f32.mrb[13].mxu0 }
 0x1c7   : > { %v926_v5 = vmax.f32 %v821_v59, %v894_v62  ;;  %v827_v6 = vadd.f32 %v826_v3, %v675_v61  ;;  %v705_v59 = vpop.permute.xlu0 %704 }
 0x1c8   : > { %v1169_v7 = vpack.c.bf16 %v925_v1, %v923_v0  ;;  %v895_v11 = vmul.f32 0.2, %v825_v2 }
 0x1c9   : > { %v830_v9 = vpop.f32.mrb[14].mxu0  ;;  %v1167_v10 = vpack.c.bf16 %v926_v5, %v924_v4  ;;  %v896_v14 = vmul.f32 0.2, %v827_v6 }
 0x1ca   : > { %v831_v12 = vadd.f32 %v830_v9, %v680_v8  ;;  %v832_v13 = vpop.f32.mrb[15].mxu0  ;;  %v927_v39 = vmax.f32 %v825_v2, %v895_v11 }
 0x1cb   : > { %v833_v15 = vadd.f32 %v832_v13, %v680_v8  ;;  %1168 = vmatprep.subr.bf16.mxu1 %v1167_v10  ;;  %v928_v23 = vmax.f32 %v827_v6, %v896_v14  ;;  %v710_v6 = vpop.permute.xlu1 %709 }
 0x1cc   : > { %v897_v16 = vmul.f32 0.2, %v831_v12  ;;  %1170 = vmatpush1.bf16.msra.mxu1 %v1169_v7 }
 0x1cd   : > { %v898_v18 = vmul.f32 0.2, %v833_v15  ;;  %v836_v19 = vpop.f32.mrb[16].mxu0 }
 0x1ce   : > { %v929_v20 = vmax.f32 %v831_v12, %v897_v16  ;;  %v837_v21 = vadd.f32 %v836_v19, %v685_v17  ;;  %v838_v22 = vpop.f32.mrb[17].mxu0 }
 0x1cf   : > { %v930_v24 = vmax.f32 %v833_v15, %v898_v18  ;;  %v839_v25 = vadd.f32 %v838_v22, %v685_v17  ;;  %v715_v15 = vpop.permute.xlu0 %714 }
 0x1d0   : > { %v1173_v26 = vpack.c.bf16 %v929_v20, %v927_v39  ;;  %v899_v30 = vmul.f32 0.2, %v837_v21 }
 0x1d1   : > { %v842_v28 = vpop.f32.mrb[18].mxu0  ;;  %v1171_v29 = vpack.c.bf16 %v930_v24, %v928_v23  ;;  %v900_v33 = vmul.f32 0.2, %v839_v25 }
 0x1d2   : > { %v843_v31 = vadd.f32 %v842_v28, %v690_v27  ;;  %v844_v32 = vpop.f32.mrb[19].mxu0  ;;  %v931_v40 = vmax.f32 %v837_v21, %v899_v30 }
 0x1d3   : > { %v845_v34 = vadd.f32 %v844_v32, %v690_v27  ;;  %1172 = vmatprep.subr.bf16.mxu1 %v1171_v29  ;;  %v932_v44 = vmax.f32 %v839_v25, %v900_v33  ;;  %v720_v25 = vpop.permute.xlu1 %719 }
 0x1d4   : > { %v901_v35 = vmul.f32 0.2, %v843_v31  ;;  %1174 = vmatpush1.bf16.msra.mxu1 %v1173_v26 }
 0x1d5   : > { %v902_v37 = vmul.f32 0.2, %v845_v34  ;;  %v848_v38 = vpop.f32.mrb[20].mxu0 }
 0x1d6   : > { %v933_v41 = vmax.f32 %v843_v31, %v901_v35  ;;  %v849_v42 = vadd.f32 %v848_v38, %v695_v36  ;;  %v850_v43 = vpop.f32.mrb[21].mxu0 }
 0x1d7   : > { %v934_v45 = vmax.f32 %v845_v34, %v902_v37  ;;  %v851_v46 = vadd.f32 %v850_v43, %v695_v36  ;;  %v1301_v43 = vmov 1966171168  }
 0x1d8   : > { %v1177_v47 = vpack.c.bf16 %v933_v41, %v931_v40  ;;  %v903_v56 = vmul.f32 0.2, %v849_v42 }
 0x1d9   : > { %v854_v55 = vpop.f32.mrb[22].mxu0  ;;  %v1175_v49 = vpack.c.bf16 %v934_v45, %v932_v44  ;;  %v904_v54 = vmul.f32 0.2, %v851_v46  ;;  %v1025_v44 = vunpack.c.l.s4 %v1301_v43  ;;  %v949_v45 = vstv %s948_s10 }
 0x1da   : > { %v855_v52 = vadd.f32 %v854_v55, %v700_v48  ;;  %v856_v53 = vpop.f32.mrb[23].mxu0  ;;  %v935_v62 = vmax.f32 %v849_v42, %v903_v56  ;;  %v947_v42 = vld [vmem:[%s1705_s5] sm:$0x1] }
 0x1db   : > { %v857_v57 = vadd.f32 %v856_v53, %v700_v48  ;;  %1176 = vmatprep.subr.bf16.mxu1 %v1175_v49  ;;  %v936_v2 = vmax.f32 %v851_v46, %v904_v54  ;;  %v1026_v46 = vunpack.c.0.s8 %v1025_v44 }
 0x1dc   : > { %v905_v58 = vmul.f32 0.2, %v855_v52  ;;  %1178 = vmatpush1.bf16.msra.mxu1 %v1177_v47 }
 0x1dd   : > { %v906_v60 = vmul.f32 0.2, %v857_v57  ;;  %v860_v61 = vpop.f32.mrb[24].mxu0  ;;  %v1029_v56 = vsub.s32 %v1026_v46, %v1542_v51 }
 0x1de   : > { %v937_v63 = vmax.f32 %v855_v52, %v905_v58  ;;  %v861_v0 = vadd.f32 %v860_v61, %v705_v59  ;;  %v862_v1 = vpop.f32.mrb[25].mxu0 }
 0x1df   : > { %v938_v3 = vmax.f32 %v857_v57, %v906_v60  ;;  %v863_v4 = vadd.f32 %v862_v1, %v705_v59 }
 0x1e0   : > { %v1181_v5 = vpack.c.bf16 %v937_v63, %v935_v62  ;;  %v907_v9 = vmul.f32 0.2, %v861_v0 }
 0x1e1   : > { %v866_v7 = vpop.f32.mrb[26].mxu0  ;;  %v1179_v8 = vpack.c.bf16 %v938_v3, %v936_v2  ;;  %v908_v12 = vmul.f32 0.2, %v863_v4 }
 0x1e2   : > { %v867_v10 = vadd.f32 %v866_v7, %v710_v6  ;;  %v868_v11 = vpop.f32.mrb[27].mxu0  ;;  %v939_v18 = vmax.f32 %v861_v0, %v907_v9 }
 0x1e3   : > { %v869_v13 = vadd.f32 %v868_v11, %v710_v6  ;;  %1180 = vmatprep.subr.bf16.mxu1 %v1179_v8  ;;  %v940_v21 = vmax.f32 %v863_v4, %v908_v12 }
 0x1e4   : > { %v909_v14 = vmul.f32 0.2, %v867_v10  ;;  %1182 = vmatpush1.bf16.msra.mxu1 %v1181_v5 }
 0x1e5   : > { %v910_v16 = vmul.f32 0.2, %v869_v13  ;;  %v872_v17 = vpop.f32.mrb[28].mxu0 }
 0x1e6   : > { %v941_v19 = vmax.f32 %v867_v10, %v909_v14  ;;  %v873_v39 = vadd.f32 %v872_v17, %v715_v15  ;;  %v874_v20 = vpop.f32.mrb[29].mxu0 }
 0x1e7   : > { %v942_v22 = vmax.f32 %v869_v13, %v910_v16  ;;  %v875_v23 = vadd.f32 %v874_v20, %v715_v15 }
 0x1e8   : > { %v1185_v24 = vpack.c.bf16 %v941_v19, %v939_v18  ;;  %v911_v28 = vmul.f32 0.2, %v873_v39 }
 0x1e9   : > { %v878_v26 = vpop.f32.mrb[30].mxu0  ;;  %v1183_v27 = vpack.c.bf16 %v942_v22, %v940_v21  ;;  %v912_v31 = vmul.f32 0.2, %v875_v23 }
 0x1ea   : > { %v879_v29 = vadd.f32 %v878_v26, %v720_v25  ;;  %v880_v30 = vpop.f32.mrb[31].mxu0  ;;  %v943_v35 = vmax.f32 %v873_v39, %v911_v28 }
 0x1eb   : > { %v881_v32 = vadd.f32 %v880_v30, %v720_v25  ;;  %1184 = vmatprep.subr.bf16.mxu1 %v1183_v27  ;;  %v944_v37 = vmax.f32 %v875_v23, %v912_v31 }
 0x1ec   : > { %v913_v33 = vmul.f32 0.2, %v879_v29  ;;  %1186 = vmatpush1.bf16.msra.mxu1 %v1185_v24 }
 0x1ed   : > { %v914_v34 = vmul.f32 0.2, %v881_v32 }
 0x1ee   : > { %v945_v36 = vmax.f32 %v879_v29, %v913_v33 }
 0x1ef   : > { %v946_v38 = vmax.f32 %v881_v32, %v914_v34 }
 0x1f0   : > { %v1189_v40 = vpack.c.bf16 %v945_v36, %v943_v35 }
 0x1f1   : > { %v1187_v41 = vpack.c.bf16 %v946_v38, %v944_v37 }
 0x1f3   : > { %1188 = vmatprep.subr.bf16.mxu1 %v1187_v41 }
 0x1f4   : > { %1190 = vmatpush1.bf16.msra.mxu1 %v1189_v40 }
 0x1f7   : > { %1015 = vmatmul.mubr.f32.vlgmr.msra.gmra.mrb[0].mxu1 %v947_v42 }
 0x2ca   : > { %v1016_v47 = vpop.f32.mrb[0].mxu1 }
 0x2cb   : > { %v1017_v48 = vadd.f32 %v1016_v47, %v949_v45  ;;  %v1018_v55 = vpop.f32.mrb[1].mxu1 }
 0x2cc   : > { %v1019_v49 = vadd.f32 %v1018_v55, %v949_v45 }
 0x2ce   : > { %v1023_v52 = vcombine.low %v1017_v48, %v1019_v49 }
 0x2d0   : > { %v1030_v53 = vrot.slane %v1023_v52, %v1029_v56 }
 0x2d2   : > { %v1037_v54 = vrot.slane %v1030_v53, %v1029_v56 }
 0x2d4   : > { %1043 = vst.msk [vmem:[%s271_s17] sm:$0x3] %vm1041_vm0, %v1037_v54 }
 0x2d5   : > { %1248 = shalt.err (!%p1245_p3)
}
 0x2d6   : > { %s1249_s30 = scalar_lea.hbm %s1658_s21, 32  ;;  %s1253_s14 = scalar_lea.hbm %s1707_s7, 64 }
 0x2d7   : > { %p1250_p4 = scmp.ne.s32.totalorder %s1658_s21, %s1249_s30  ;;  %p1254_p9 = scmp.lt.u32.totalorder %s1658_s21, %s1707_s7 }
 0x2d8   : > { %p1255_p10 = scmp.lt.u32.totalorder %s1253_s14, %s1249_s30  ;;  %p1257_p12 = scmp.lt.u32.totalorder %s1249_s30, %s1658_s21 }
 0x2d9   : > { %p1251_p7 = pnand %p1250_p4, %p1384_p5 }
 0x2da   : > { %p1256_p11 = por %p1255_p10, %p1254_p9 }
 0x2db   : > { %p1252_p8 = pneg %p1251_p7 }
 0x2dc   : > { %p1258_p13 = por %p1257_p12, %p1256_p11 }
 0x2de   : > { %p1259_p0 = pnand %p1258_p13, %p1252_p8 }
 0x2e0   : > { %1262 = shalt.err (!%p1259_p0)
}
 0x2e1   : > { %1191 = dma.vmem_to_hbm [thread:$0]  (%p1384_p5), %s1660_s18, 32, %s1658_s21, %s1045_s22  }
 0x2e2 PF: > { %p1197_p1 = scmp.ge.s32.totalorder %s1297_s29, 2  ;;  %s1071_s17 = sand.u32 1, %s1285_s26  }
 0x2e3   : > { %s1072_s19 = scalar_lea.sflag [#allocation4], %s1071_s17 }
 0x2e4   : > { %p1194_p2 = pnand %p1197_p1, %p1388_p6 }
 0x2e6   : > { %1280 = dma.done.wait (!%p1194_p2), %s1072_s19, 32  }
 0x2e7   : > { %1282 = vsyncadd (!%p1194_p2), %s1072_s19, 4294967264  ;;  %p18_p3 = scmp.ge.s32.totalorder %s1371_s8, 4   ;;  %s1710_s26 = smov %s1289_s27 }
 0x2e8   : > { %s1711_s27 = smov %s1293_s28  ;;  %s1712_s28 = smov %s1382_s11 }
 0x2e9   : > { %s1713_s29 = smov %s1371_s8  ;;  %20 = sbr.rel (!%p18_p3) target bundleno = 5 (0x5), region = 83 }
 0x2f0   :  { %1077 = vsyncpa [#allocation4], 1 }
 0x2f1   :  { %1079 = vsyncpa [#allocation4 + $0x1], 1 }

</bundles_post_ra>
